<compile_context>
chip_gen: v6e
topology: v6e:2x2x1
jax: 0.10.0
libtpu: 0.0.40
codegen_flags: <defaults>
</compile_context>

<pallas_src>
import jax
import jax.numpy as jnp
from jax.experimental import pallas as pl
from jax.experimental.pallas import tpu as pltpu


_LANE = 128            # vreg lane width: last dim must be lane-dense
_SUBLANE = 8           # f32 sublane tile
_MAX_TILE_ROWS = 512   # 512 x 128 x 4B = 256 KiB/buffer; 4 buffers ~ 1 MiB
                       # -> fits v5e (16 MiB), v6e (32 MiB), v7x (32 MiB) scoped VMEM


def _identity_copy_kernel(x_ref, o_ref):
    # Trivial forward body: pass the analysis input through (lane-dense tile).
    o_ref[...] = x_ref[...]


def _materialized_identity(x: jax.Array) -> jax.Array:
    """Lane-dense, tiled, input/output-aliased identity copy via Pallas."""
    orig_shape = x.shape
    total = x.size

    # Flatten to a lane-dense 2D slab: (rows, 128), rows padded to a sublane
    # multiple and to a whole number of row-tiles.
    rows = -(-total // _LANE)
    rows = -(-rows // _SUBLANE) * _SUBLANE
    tile_r = min(_MAX_TILE_ROWS, rows)
    rows_padded = -(-rows // tile_r) * tile_r
    padded_total = rows_padded * _LANE

    flat = x.reshape(-1)
    if padded_total != total:
        flat = jnp.pad(flat, (0, padded_total - total))
    flat2d = flat.reshape(rows_padded, _LANE)

    n_tiles = rows_padded // tile_r

    out = pl.pallas_call(
        _identity_copy_kernel,
        out_shape=jax.ShapeDtypeStruct((rows_padded, _LANE), x.dtype),
        grid=(n_tiles,),
        in_specs=[pl.BlockSpec((tile_r, _LANE), lambda i: (i, 0))],
        out_specs=pl.BlockSpec((tile_r, _LANE), lambda i: (i, 0)),
        input_output_aliases={0: 0},  # reuse the input HBM buffer for output
        compiler_params=pltpu.CompilerParams(
            dimension_semantics=("parallel",),  # shard grid across TCs (v7x)
        ),
    )(flat2d)

    return out.reshape(-1)[:total].reshape(orig_shape)


_materialized_identity_jit = jax.jit(_materialized_identity)


def analysis_forward(x: jax.Array, materialize: bool = False) -> jax.Array:
    """Pallas equivalent of Analysis.forward (a no-op base-class forward).

    Default (optimized) path: no kernel launch, zero HBM traffic -> return x.
    `materialize=True`: run the lane-dense, tiled, aliased Pallas identity
    copy for callers that require a materialized pallas_call.
    """
    if not materialize:
        return x
    return _materialized_identity_jit(x)


if __name__ == "__main__":
    key = jax.random.PRNGKey(0)
    # Small NCHW input consistent with an analysis front-end.
    x = jax.random.normal(key, (2, 4, 16, 16), dtype=jnp.float32)

    # Optimized path (the real answer for a no-op forward): no kernel at all.
    y_fast = analysis_forward(x)

    # Materialized path: exercises the Pallas kernel once.
    y_kernel = analysis_forward(x, materialize=True)
    jax.block_until_ready(y_kernel)

    # Sanity checks: identity semantics, shapes and dtypes preserved.
    assert y_fast.shape == x.shape and y_fast.dtype == x.dtype
    assert y_kernel.shape == x.shape and y_kernel.dtype == x.dtype
    assert bool(jnp.allclose(y_fast, x))
    assert bool(jnp.allclose(y_kernel, x))

    print("KERNEL_OK")
</pallas_src>

<mosaic_0001>
module attributes {stable_mosaic.version = 11 : i64} {
  func.func @_identity_copy_kernel(%arg0: i32, %arg1: memref<16x128xf32, #tpu.memory_space<vmem>>, %arg2: memref<16x128xf32, #tpu.memory_space<vmem>>) attributes {dimension_semantics = [#tpu.dimension_semantics<parallel>], iteration_bounds = array<i64: 1>, scalar_prefetch = 0 : i64, scratch_operands = 0 : i64, tpu.core_type = #tpu.core_type<tc>, window_params = [{transform_indices = @transform_0, window_bounds = array<i64: 16, 128>}, {transform_indices = @transform_1, window_bounds = array<i64: 16, 128>}]} {
    %c0 = arith.constant 0 : index
    %c0_0 = arith.constant 0 : index
    %0 = vector.load %arg1[%c0, %c0_0] : memref<16x128xf32, #tpu.memory_space<vmem>>, vector<16x128xf32>
    %c0_1 = arith.constant 0 : index
    %c0_2 = arith.constant 0 : index
    %1 = vector.load %arg2[%c0_1, %c0_2] : memref<16x128xf32, #tpu.memory_space<vmem>>, vector<16x128xf32>
    tpu.vector_store %arg2[%c0_1, %c0_2], %0 {strides = array<i32>} : memref<16x128xf32, #tpu.memory_space<vmem>>, vector<16x128xf32>,
    return
  }
  func.func @transform_0(%arg0: i32) -> (i32, i32) {
    %c0_i32 = arith.constant 0 : i32
    %c0_i32_0 = arith.constant 0 : i32
    return %arg0, %c0_i32 : i32, i32
  }
  func.func @transform_1(%arg0: i32) -> (i32, i32) {
    %c0_i32 = arith.constant 0 : i32
    %c0_i32_0 = arith.constant 0 : i32
    return %arg0, %c0_i32 : i32, i32
  }
}

</mosaic_0001>

<bundles_post_ra>
// kernel: _materialized_identity.1
= control target key start
LH: loop header
LB: loop body
LE: loop exit
PB: predicated region body
PF: predicated region fallthrough
CT: control target
= control target key end

     0   :  { %s38_s0 = inlined_call_operand.vmem [shape: f32[16,128], index: 0, kind: input, shape index: {}, may-alias: {0,1}]   ;;  %s39_s1 = inlined_call_operand.vmem [shape: f32[16,128], index: 1, kind: output, shape index: {}, may-alias: {0,1}]  }
   0x1   :  { %v8_v0 = vld [vmem:[%s38_s0] sm:$0xff]  ;;  %v9_v1 = vld [vmem:[%s38_s0 + $0x8] sm:$0xff] }
   0x2   :  { %10 = vst [vmem:[%s39_s1] sm:$0xff] %v8_v0  ;;  %11 = vst [vmem:[%s39_s1 + $0x8] sm:$0xff] %v9_v1 }

</bundles_post_ra>
